<compile_context>
chip_gen: v7x
topology: tpu7x:2x2x1
jax: 0.10.0
libtpu: 0.0.40
codegen_flags: <defaults>
</compile_context>

<pallas_src>
import math
import functools

import jax
import jax.numpy as jnp
from jax.experimental import pallas as pl
from jax.experimental.pallas import tpu as pltpu


# ---------------------------------------------------------------------------
# Tiling / VMEM heuristics (generation-aware)
# ---------------------------------------------------------------------------
def _vmem_capacity_bytes():
    """Per-core VMEM capacity; conservative (v7x-sized) fallback on failure."""
    try:
        return int(pltpu.get_tpu_info().vmem_capacity_bytes)
    except Exception:
        return 64 * 1024 * 1024


def _default_vmem_limit():
    cap = _vmem_capacity_bytes()
    # ~96 MiB on 128-MiB parts (v5e / v6e), ~48 MiB on 64-MiB parts (v7x).
    return int(min(96 * 1024 * 1024, (3 * cap) // 4))


def _pick_tile(n, candidates=(2048, 1024, 512, 256, 128)):
    """Largest multiple-of-128 candidate dividing n, else the full extent."""
    for c in candidates:
        if n >= c and n % c == 0:
            return c
    return n


def _pick_q_tile(HW, Q, C, C2, OMtot, vmem_limit):
    """Largest q-tile whose in-kernel working set fits the VMEM budget.

    Working-set model (bytes): double-buffered resident bf16 value block +
    the [HW, TQ] f32 temporaries of the A-build (A, row_idx, live selects) +
    the TQ-streamed om / out blocks and the dcn scratch.
    """
    divisors = [t for t in (512, 256, 128) if Q >= t and Q % t == 0]
    if not divisors:
        return Q                                     # Q < 128 or no 128-divisor
    resident = 2 * C * HW * 2                        # bf16 value, 2 pipeline bufs
    budget = (7 * vmem_limit) // 10
    for tq in divisors:                              # largest first
        temps = 8 * HW * tq * 4                      # A + row_idx + live selects
        stream = 2 * tq * 4 * (OMtot + C2 + C)       # om/out double-buffers + scratch
        if resident + temps + stream <= budget:
            return tq
    return divisors[-1]                              # smallest tile; let Mosaic spill


# ---------------------------------------------------------------------------
# Fused 1x1 projections (value_proj + offset_mask), channel-first.
#   x_cf  : [B, Cin, HW]  (f32; cast to bf16 in-kernel)
#   w_cat : [C + G*OMg_pad, Cin]  bf16 (prepared once; rows = out channels)
#   b_cat : [C + G*OMg_pad, 1]    f32
#   ->  value [B, C, HW] bf16,  offset_mask [B, G*OMg_pad, HW] f32
# ---------------------------------------------------------------------------
def _fused_proj_kernel(x_ref, w_ref, b_ref, val_ref, om_ref, *, C):
    # bf16 MXU matmul with f32 accumulation; x is cast in-kernel so its HBM
    # read stays a single f32 pass (no extra wrapper-side round trip).
    x_bf = x_ref[0].astype(jnp.bfloat16)                        # [Cin, THW]
    acc = jnp.dot(w_ref[...], x_bf, preferred_element_type=jnp.float32)
    acc = acc + b_ref[...]                                      # bias over lanes
    val_ref[0] = acc[:C, :].astype(val_ref.dtype)               # bf16 value
    om_ref[0] = acc[C:, :].astype(om_ref.dtype)                 # f32 offsets/mask


def fused_value_offsetmask_proj(x_cf, w_cat_bf16, b_cat_col, *, C, vmem_limit):
    B, Cin, HW = x_cf.shape
    Ctot = w_cat_bf16.shape[0]
    OM = Ctot - C
    THW = _pick_tile(HW)
    kern = functools.partial(_fused_proj_kernel, C=C)
    return pl.pallas_call(
        kern,
        out_shape=(jax.ShapeDtypeStruct((B, C, HW), jnp.bfloat16),
                   jax.ShapeDtypeStruct((B, OM, HW), jnp.float32)),
        grid_spec=pltpu.PrefetchScalarGridSpec(
            num_scalar_prefetch=0,
            grid=(B, HW // THW),
            in_specs=[
                pl.BlockSpec((1, Cin, THW), lambda b, t: (b, 0, t)),
                pl.BlockSpec((Ctot, Cin), lambda b, t: (0, 0)),   # resident (bf16)
                pl.BlockSpec((Ctot, 1), lambda b, t: (0, 0)),     # resident bias
            ],
            out_specs=[
                pl.BlockSpec((1, C, THW), lambda b, t: (b, 0, t)),
                pl.BlockSpec((1, OM, THW), lambda b, t: (b, 0, t)),
            ],
        ),
        compiler_params=pltpu.CompilerParams(
            dimension_semantics=("parallel", "parallel"),
            vmem_limit_bytes=vmem_limit),
    )(x_cf, w_cat_bf16, b_cat_col)


# ---------------------------------------------------------------------------
# DCNv4 deformable sampling core + fused output_proj, channel-first, q-tiled.
#   value : [B, C, HW]  bf16 (resident across the q axis)
#   om    : [B, G*OMg_pad, Q]  f32 (query tile per grid step)
#   wo    : [C2, C] f32, bo : [C2, 1] f32   (resident)
#   out   : [B, C2, Q]
# ---------------------------------------------------------------------------
def _dcn_core_kernel(value_ref, om_ref, wo_ref, bo_ref, out_ref, dcn_acc, *,
                     H_in, W_in, W_out, kh, kw, sh, sw, ph, pw, dil_h, dil_w,
                     offset_scale, Kg, G, Cg, OMg_pad, TQ, remove_center):
    HW = H_in * W_in

    q0 = pl.program_id(1) * TQ
    q_lane = jax.lax.broadcasted_iota(jnp.int32, (1, TQ), 1) + q0
    h_out = (q_lane // W_out).astype(jnp.float32)
    w_out = (q_lane % W_out).astype(jnp.float32)

    # Reference-point math follows the DCNv4 CUDA im2col kernel (unpadded
    # pixel coordinates, zero-padded bilinear sampling).
    p0_w = float((dil_w * (kw - 1)) // 2 - pw) + w_out * sw
    p0_h = float((dil_h * (kh - 1)) // 2 - ph) + h_out * sh
    p0_w_ = p0_w - ((dil_w * (kw - 1)) // 2) * offset_scale
    p0_h_ = p0_h - ((dil_h * (kh - 1)) // 2) * offset_scale

    # spatial index on the sublane axis, query index on the lane axis
    row_idx = jax.lax.broadcasted_iota(jnp.int32, (HW, TQ), 0)

    def group_body(g, carry):
        # aligned dynamic sublane slices (OMg_pad % 8 == 0, Cg % 16 == 0)
        om_base = pl.multiple_of(g * OMg_pad, 8)
        om_g = om_ref[0, pl.ds(om_base, OMg_pad), :]            # [OMg_pad, TQ] f32

        A = jnp.zeros((HW, TQ), jnp.float32)                    # sampling matrix
        p = 0
        for iw in range(kw):                                    # w-major point order
            for jh in range(kh):
                if (remove_center and kw % 2 == 1 and kh % 2 == 1
                        and iw == kw // 2 and jh == kh // 2):
                    continue
                off_w = om_g[2 * p:2 * p + 1, :]                # (1, TQ)
                off_h = om_g[2 * p + 1:2 * p + 2, :]            # (1, TQ)
                attn = om_g[2 * Kg + p:2 * Kg + p + 1, :]       # raw (no softmax)
                loc_w = p0_w_ + (iw * dil_w + off_w) * offset_scale
                loc_h = p0_h_ + (jh * dil_h + off_h) * offset_scale

                w0 = jnp.floor(loc_w)
                h0 = jnp.floor(loc_h)
                lw = loc_w - w0
                lh = loc_h - h0

                contrib = None
                for dh_, dw_, wgt in ((0, 0, (1.0 - lh) * (1.0 - lw)),
                                      (0, 1, (1.0 - lh) * lw),
                                      (1, 0, lh * (1.0 - lw)),
                                      (1, 1, lh * lw)):
                    hc = h0 + dh_
                    wc = w0 + dw_
                    inb = ((hc >= 0.0) & (hc < H_in)
                           & (wc >= 0.0) & (wc < W_in))
                    flat = (hc * W_in + wc).astype(jnp.int32)   # (1, TQ)
                    # OOB corners rely on w_eff == 0 (flat may alias a valid
                    # row); keep the inb mask coupled to the weight.
                    w_eff = jnp.where(inb, wgt * attn, 0.0)     # (1, TQ)
                    term = jnp.where(row_idx == flat, w_eff, 0.0)
                    contrib = term if contrib is None else contrib + term
                # single A read-modify-write per sampling point (not per corner)
                A = A + contrib
                p += 1

        val_base = pl.multiple_of(g * Cg, 16)
        val_g = value_ref[0, pl.ds(val_base, Cg), :].astype(jnp.float32)
        # f32 sampling matmul: MXU is otherwise idle, so the slower f32 pass
        # is hidden and the bilinear*modulation weights keep full precision.
        res = jnp.dot(val_g, A, preferred_element_type=jnp.float32)   # [Cg, TQ]
        dcn_acc[pl.ds(val_base, Cg), :] = res
        return carry

    jax.lax.fori_loop(0, G, group_body, 0)

    # fused output_proj on the idle MXU: the [C, Q] DCN intermediate never
    # leaves VMEM.
    out = jnp.dot(wo_ref[...], dcn_acc[...],
                  preferred_element_type=jnp.float32) + bo_ref[...]
    out_ref[0] = out.astype(out_ref.dtype)


def dcn_core_pallas(value_cf, om_cf, wo, bo_col, *, H_in, W_in, H_out, W_out,
                    kh, kw, sh, sw, ph, pw, dil_h, dil_w, offset_scale, Kg,
                    group, OMg_pad, remove_center, out_dtype,
                    q_tile=None, vmem_limit=None):
    B, C, HW = value_cf.shape
    OMtot = om_cf.shape[1]
    C2 = wo.shape[0]
    Q = H_out * W_out
    Cg = C // group
    if vmem_limit is None:
        vmem_limit = _default_vmem_limit()
    TQ = q_tile if q_tile is not None else _pick_q_tile(HW, Q, C, C2, OMtot,
                                                        vmem_limit)
    assert Q % TQ == 0, "q_tile must divide H_out*W_out"

    kern = functools.partial(
        _dcn_core_kernel, H_in=H_in, W_in=W_in, W_out=W_out, kh=kh, kw=kw,
        sh=sh, sw=sw, ph=ph, pw=pw, dil_h=dil_h, dil_w=dil_w,
        offset_scale=offset_scale, Kg=Kg, G=group, Cg=Cg, OMg_pad=OMg_pad,
        TQ=TQ, remove_center=remove_center)

    return pl.pallas_call(
        kern,
        out_shape=jax.ShapeDtypeStruct((B, C2, Q), out_dtype),
        grid_spec=pltpu.PrefetchScalarGridSpec(
            num_scalar_prefetch=0,
            grid=(B, Q // TQ),
            in_specs=[
                # full bf16 value block, resident across the q axis
                # TODO(synk): pipeline_mode=pl.Buffered(1) here would save one
                # C*HW buffer against v7x's 64 MiB (value only changes per b).
                pl.BlockSpec((1, C, HW), lambda b, q: (b, 0, 0)),
                pl.BlockSpec((1, OMtot, TQ), lambda b, q: (b, 0, q)),
                pl.BlockSpec((C2, C), lambda b, q: (0, 0)),       # resident Wo
                pl.BlockSpec((C2, 1), lambda b, q: (0, 0)),       # resident bias
            ],
            out_specs=pl.BlockSpec((1, C2, TQ), lambda b, q: (b, 0, q)),
            scratch_shapes=[pltpu.VMEM((C, TQ), jnp.float32)],
        ),
        compiler_params=pltpu.CompilerParams(
            dimension_semantics=("parallel", "parallel"),
            vmem_limit_bytes=vmem_limit),
    )(value_cf, om_cf, wo, bo_col)


# ---------------------------------------------------------------------------
# One-time parameter preparation (hoisted out of the per-call forward path)
# ---------------------------------------------------------------------------
def prepare_dcnv4_params(params, *, group, kernel_size, remove_center=False):
    """Fuse / re-layout the 1x1 projection weights once.

    * value_proj and offset_mask weights are stacked into one matrix so the
      first kernel is a single wide matmul (stored bf16 for the MXU).
    * offset_mask rows are re-laid-out group-major with each group's 3*Kg
      channels zero-padded to OMg_pad (multiple of 8) so the DCN core's
      dynamic per-group sublane slice is aligned.  The module's own global
      pad-to-multiple-of-8 channels (never read by DCNv4) are dropped.
    """
    Kg = kernel_size * kernel_size - int(remove_center)
    OMg = 3 * Kg
    OMg_pad = int(math.ceil(OMg / 8) * 8)
    cin = params["value_proj_w"].shape[1]

    w_om = params["offset_mask_w"][:group * OMg].reshape(group, OMg, cin)
    b_om = params["offset_mask_b"][:group * OMg].reshape(group, OMg)
    w_om_pad = jnp.zeros((group, OMg_pad, cin), w_om.dtype).at[:, :OMg, :].set(w_om)
    b_om_pad = jnp.zeros((group, OMg_pad), b_om.dtype).at[:, :OMg].set(b_om)

    w_cat = jnp.concatenate(
        [params["value_proj_w"], w_om_pad.reshape(group * OMg_pad, cin)], axis=0)
    b_cat = jnp.concatenate(
        [params["value_proj_b"], b_om_pad.reshape(group * OMg_pad)], axis=0)

    return {
        "w_cat": w_cat.astype(jnp.bfloat16),            # bf16 MXU operands
        "b_cat": b_cat.astype(jnp.float32)[:, None],
        "wo": params["output_proj_w"].astype(jnp.float32),
        "bo": params["output_proj_b"].astype(jnp.float32)[:, None],
        "OMg_pad": OMg_pad,
        "Kg": Kg,
    }


# ---------------------------------------------------------------------------
# Full module forward (Pallas path) — NCHW in, NCHW out, no transposes.
# ---------------------------------------------------------------------------
def deform_conv2d_v4_forward(x_nchw, prepared, *, kernel_size=3, stride=1,
                             pad=None, dilation=1, group=None,
                             offset_scale=1.0, remove_center=False,
                             q_tile=None):
    B, C, H, W = x_nchw.shape
    if group is None:
        group = C // 16
    if pad is None:
        pad = dilation * (kernel_size - 1) // 2          # autopad
    Kg = kernel_size * kernel_size - int(remove_center)
    assert Kg == prepared["Kg"]
    OMg_pad = prepared["OMg_pad"]

    H_out = (H + 2 * pad - (dilation * (kernel_size - 1) + 1)) // stride + 1
    W_out = (W + 2 * pad - (dilation * (kernel_size - 1) + 1)) // stride + 1
    assert (H_out, W_out) == (H, W), "offset_mask is a 1x1 stride-1 conv"

    vmem_limit = _default_vmem_limit()
    x_cf = x_nchw.reshape(B, C, H * W)                   # NCHW -> channel-first rows

    # TODO(synk): dw_kernel_size depthwise conv path (module default None -> Identity).
    value_cf, om_cf = fused_value_offsetmask_proj(
        x_cf, prepared["w_cat"], prepared["b_cat"], C=C, vmem_limit=vmem_limit)

    # TODO(synk): center_feature_scale branch (module default False) not implemented.
    out_cf = dcn_core_pallas(
        value_cf, om_cf, prepared["wo"], prepared["bo"],
        H_in=H, W_in=W, H_out=H_out, W_out=W_out,
        kh=kernel_size, kw=kernel_size, sh=stride, sw=stride, ph=pad, pw=pad,
        dil_h=dilation, dil_w=dilation, offset_scale=offset_scale, Kg=Kg,
        group=group, OMg_pad=OMg_pad, remove_center=int(remove_center),
        out_dtype=x_nchw.dtype, q_tile=q_tile, vmem_limit=vmem_limit)

    C2 = out_cf.shape[1]
    return out_cf.reshape(B, C2, H_out, W_out)           # already NCHW


# ---------------------------------------------------------------------------
# Pure-jnp reference (gather-based, independent of the kernel layout)
# ---------------------------------------------------------------------------
def _dcn_core_ref(value, om, *, H_in, W_in, H_out, W_out, kh, kw, sh, sw, ph,
                  pw, dil_h, dil_w, offset_scale, Kg, remove_center):
    B, G, HW, Cg = value.shape
    Q = H_out * W_out
    q = jnp.arange(Q)
    h_out = (q // W_out).astype(jnp.float32)
    w_out = (q % W_out).astype(jnp.float32)
    p0_w_ = ((dil_w * (kw - 1)) // 2 - pw) + w_out * sw - ((dil_w * (kw - 1)) // 2) * offset_scale
    p0_h_ = ((dil_h * (kh - 1)) // 2 - ph) + h_out * sh - ((dil_h * (kh - 1)) // 2) * offset_scale
    out = jnp.zeros((B, G, Q, Cg), jnp.float32)
    p = 0
    for iw in range(kw):
        for jh in range(kh):
            if (remove_center and kw % 2 == 1 and kh % 2 == 1
                    and iw == kw // 2 and jh == kh // 2):
                continue
            off_w = om[..., 2 * p]
            off_h = om[..., 2 * p + 1]
            attn = om[..., 2 * Kg + p]
            loc_w = p0_w_ + (iw * dil_w + off_w) * offset_scale
            loc_h = p0_h_ + (jh * dil_h + off_h) * offset_scale
            w0 = jnp.floor(loc_w)
            h0 = jnp.floor(loc_h)
            lw = loc_w - w0
            lh = loc_h - h0
            for ch_, cw_, wgt in ((0, 0, (1 - lh) * (1 - lw)),
                                  (0, 1, (1 - lh) * lw),
                                  (1, 0, lh * (1 - lw)),
                                  (1, 1, lh * lw)):
                hc = h0 + ch_
                wc = w0 + cw_
                inb = (hc >= 0) & (hc < H_in) & (wc >= 0) & (wc < W_in)
                flat = jnp.clip((hc * W_in + wc).astype(jnp.int32), 0, HW - 1)
                samp = jnp.take_along_axis(value, flat[..., None], axis=2)
                w_eff = jnp.where(inb, wgt * attn, 0.0)[..., None]
                out = out + w_eff * samp
            p += 1
    return out


def deform_conv2d_v4_ref(x_nchw, params, *, kernel_size=3, stride=1, pad=None,
                         dilation=1, group=None, offset_scale=1.0,
                         remove_center=False):
    B, C, H, W = x_nchw.shape
    if group is None:
        group = C // 16
    Cg = C // group
    if pad is None:
        pad = dilation * (kernel_size - 1) // 2
    Kg = kernel_size * kernel_size - int(remove_center)
    K = group * Kg

    x_rows = jnp.transpose(x_nchw, (0, 2, 3, 1)).reshape(B * H * W, C)
    x_proj = x_rows @ params["value_proj_w"].T + params["value_proj_b"]
    om_full = x_rows @ params["offset_mask_w"].T + params["offset_mask_b"]

    om = om_full[:, :K * 3].reshape(B, H * W, group, 3 * Kg)
    om = jnp.transpose(om, (0, 2, 1, 3))
    value = jnp.transpose(x_proj.reshape(B, H * W, group, Cg), (0, 2, 1, 3))

    dcn = _dcn_core_ref(
        value, om, H_in=H, W_in=W, H_out=H, W_out=W,
        kh=kernel_size, kw=kernel_size, sh=stride, sw=stride,
        ph=pad, pw=pad, dil_h=dilation, dil_w=dilation,
        offset_scale=offset_scale, Kg=Kg, remove_center=int(remove_center))

    dcn_rows = jnp.transpose(dcn, (0, 2, 1, 3)).reshape(B * H * W, C)
    out_rows = dcn_rows @ params["output_proj_w"].T + params["output_proj_b"]
    c2 = out_rows.shape[1]
    return jnp.transpose(out_rows.reshape(B, H, W, c2), (0, 3, 1, 2))


# ---------------------------------------------------------------------------
if __name__ == "__main__":
    B, C, H, W = 2, 32, 16, 16
    c2 = C
    kernel_size, stride, dilation = 3, 1, 1
    group = C // 16                      # default group = c1 // 16
    remove_center = False
    Kg = kernel_size * kernel_size - int(remove_center)
    K = group * Kg
    OM = int(math.ceil(K * 3 / 8) * 8)   # module's padded offset_mask channels

    key = jax.random.PRNGKey(0)
    kx, k1, k2, k3, k4, k5, k6 = jax.random.split(key, 7)
    x = jax.random.normal(kx, (B, C, H, W), dtype=jnp.float32)

    # NOTE: the PyTorch module zero-inits the offset_mask conv (degenerate at
    # init); we use small deterministic random weights so the deformable
    # sampling path is actually exercised.  Weights use the PyTorch Conv2d
    # 1x1 layout [Cout, Cin].
    params = {
        "value_proj_w": jax.random.normal(k1, (C, C), jnp.float32) / jnp.sqrt(C),
        "value_proj_b": 0.01 * jax.random.normal(k2, (C,), jnp.float32),
        "offset_mask_w": 0.05 * jax.random.normal(k3, (OM, C), jnp.float32),
        "offset_mask_b": 0.01 * jax.random.normal(k4, (OM,), jnp.float32),
        "output_proj_w": jax.random.normal(k5, (c2, C), jnp.float32) / jnp.sqrt(C),
        "output_proj_b": 0.01 * jax.random.normal(k6, (c2,), jnp.float32),
    }

    # one-time parameter fusion / per-group padding (hoisted out of forward)
    prepared = prepare_dcnv4_params(
        params, group=group, kernel_size=kernel_size, remove_center=remove_center)

    out = deform_conv2d_v4_forward(
        x, prepared, kernel_size=kernel_size, stride=stride, dilation=dilation,
        group=group, offset_scale=1.0, remove_center=remove_center,
        q_tile=128)                      # Q=256 -> 2 q-tiles (exercise pipeline)
    out = jax.block_until_ready(out)

    ref = deform_conv2d_v4_ref(
        x, params, kernel_size=kernel_size, stride=stride, dilation=dilation,
        group=group, offset_scale=1.0, remove_center=remove_center)

    assert out.shape == (B, c2, H, W), out.shape
    assert bool(jnp.all(jnp.isfinite(out)))
    err = jnp.abs(out - ref)
    max_err = float(jnp.max(err))
    mean_err = float(jnp.mean(err))
    # Tolerance accounts for bf16 value storage and bf16 operands in the
    # projection matmul (f32 accumulation); the sampling matrix, sampling
    # matmul and fused output_proj all run in f32.  Reference is fully f32.
    assert max_err < 5e-2, f"mismatch vs reference: max {max_err}"
    assert mean_err < 1e-2, f"mismatch vs reference: mean {mean_err}"
    print("KERNEL_OK")
</pallas_src>

<mosaic_0001>
module attributes {stable_mosaic.version = 11 : i64} {
  func.func @_fused_proj_kernel(%arg0: i32, %arg1: i32, %arg2: memref<1x32x256xf32, #tpu.memory_space<vmem>>, %arg3: memref<96x32xbf16, #tpu.memory_space<vmem>>, %arg4: memref<96x1xf32, #tpu.memory_space<vmem>>, %arg5: memref<1x32x256xbf16, #tpu.memory_space<vmem>>, %arg6: memref<1x64x256xf32, #tpu.memory_space<vmem>>) attributes {dimension_semantics = [#tpu.dimension_semantics<parallel>, #tpu.dimension_semantics<parallel>], iteration_bounds = array<i64: 2, 1>, scalar_prefetch = 0 : i64, scratch_operands = 0 : i64, tpu.core_type = #tpu.core_type<tc>, window_params = [{transform_indices = @transform_0, window_bounds = array<i64: 1, 32, 256>}, {pipeline_mode = #tpu.pipeline_mode<synchronous>, transform_indices = @transform_1, window_bounds = array<i64: 96, 32>}, {pipeline_mode = #tpu.pipeline_mode<synchronous>, transform_indices = @transform_2, window_bounds = array<i64: 96, 1>}, {transform_indices = @transform_3, window_bounds = array<i64: 1, 32, 256>}, {transform_indices = @transform_4, window_bounds = array<i64: 1, 64, 256>}]} {
    %c0 = arith.constant 0 : index
    %c0_0 = arith.constant 0 : index
    %c0_1 = arith.constant 0 : index
    %0 = vector.load %arg2[%c0, %c0_0, %c0_1] : memref<1x32x256xf32, #tpu.memory_space<vmem>>, vector<1x32x256xf32>
    %1 = vector.shape_cast %0 : vector<1x32x256xf32> to vector<32x256xf32>
    %2 = arith.truncf %1 : vector<32x256xf32> to vector<32x256xbf16>
    %c0_2 = arith.constant 0 : index
    %c0_3 = arith.constant 0 : index
    %3 = vector.load %arg3[%c0_2, %c0_3] : memref<96x32xbf16, #tpu.memory_space<vmem>>, vector<96x32xbf16>
    %cst = arith.constant dense<0.000000e+00> : vector<96x256xf32>
    %4 = tpu.matmul %3, %2, %cst {dimension_numbers = #tpu.dot_dimension_numbers<[1], [0], [0], [1], [0, 0, 1, 1], [], []>} : vector<96x32xbf16>, vector<32x256xbf16>, vector<96x256xf32> -> vector<96x256xf32>
    %c0_4 = arith.constant 0 : index
    %c0_5 = arith.constant 0 : index
    %5 = vector.load %arg4[%c0_4, %c0_5] : memref<96x1xf32, #tpu.memory_space<vmem>>, vector<96x1xf32>
    %6 = vector.broadcast %5 : vector<96x1xf32> to vector<96x256xf32>
    %7 = arith.addf %4, %6 : vector<96x256xf32>
    %8 = vector.extract_strided_slice %7 {offsets = [0, 0], sizes = [32, 256], strides = [1, 1]} : vector<96x256xf32> to vector<32x256xf32>
    %9 = arith.truncf %8 : vector<32x256xf32> to vector<32x256xbf16>
    %c0_6 = arith.constant 0 : index
    %c0_7 = arith.constant 0 : index
    %c0_8 = arith.constant 0 : index
    %10 = vector.load %arg5[%c0_6, %c0_7, %c0_8] : memref<1x32x256xbf16, #tpu.memory_space<vmem>>, vector<1x32x256xbf16>
    %11 = vector.shape_cast %10 : vector<1x32x256xbf16> to vector<32x256xbf16>
    %12 = vector.shape_cast %9 : vector<32x256xbf16> to vector<1x32x256xbf16>
    tpu.vector_store %arg5[%c0_6, %c0_7, %c0_8], %12 {strides = array<i32>} : memref<1x32x256xbf16, #tpu.memory_space<vmem>>, vector<1x32x256xbf16>,
    %13 = vector.extract_strided_slice %7 {offsets = [32, 0], sizes = [64, 256], strides = [1, 1]} : vector<96x256xf32> to vector<64x256xf32>
    %c0_9 = arith.constant 0 : index
    %c0_10 = arith.constant 0 : index
    %c0_11 = arith.constant 0 : index
    %14 = vector.load %arg6[%c0_9, %c0_10, %c0_11] : memref<1x64x256xf32, #tpu.memory_space<vmem>>, vector<1x64x256xf32>
    %15 = vector.shape_cast %14 : vector<1x64x256xf32> to vector<64x256xf32>
    %16 = vector.shape_cast %13 : vector<64x256xf32> to vector<1x64x256xf32>
    tpu.vector_store %arg6[%c0_9, %c0_10, %c0_11], %16 {strides = array<i32>} : memref<1x64x256xf32, #tpu.memory_space<vmem>>, vector<1x64x256xf32>,
    return
  }
  func.func @transform_0(%arg0: i32, %arg1: i32) -> (i32, i32, i32) {
    %c0_i32 = arith.constant 0 : i32
    %c0_i32_0 = arith.constant 0 : i32
    return %arg0, %c0_i32, %arg1 : i32, i32, i32
  }
  func.func @transform_1(%arg0: i32, %arg1: i32) -> (i32, i32) {
    %c0_i32 = arith.constant 0 : i32
    %c0_i32_0 = arith.constant 0 : i32
    %c0_i32_1 = arith.constant 0 : i32
    return %c0_i32, %c0_i32_0 : i32, i32
  }
  func.func @transform_2(%arg0: i32, %arg1: i32) -> (i32, i32) {
    %c0_i32 = arith.constant 0 : i32
    %c0_i32_0 = arith.constant 0 : i32
    %c0_i32_1 = arith.constant 0 : i32
    return %c0_i32, %c0_i32_0 : i32, i32
  }
  func.func @transform_3(%arg0: i32, %arg1: i32) -> (i32, i32, i32) {
    %c0_i32 = arith.constant 0 : i32
    %c0_i32_0 = arith.constant 0 : i32
    return %arg0, %c0_i32, %arg1 : i32, i32, i32
  }
  func.func @transform_4(%arg0: i32, %arg1: i32) -> (i32, i32, i32) {
    %c0_i32 = arith.constant 0 : i32
    %c0_i32_0 = arith.constant 0 : i32
    return %arg0, %c0_i32, %arg1 : i32, i32, i32
  }
}

</mosaic_0001>

<bundles_post_ra>
// kernel: tpu_custom_call.1
= control target key start
LH: loop header
LB: loop body
LE: loop exit
PB: predicated region body
PF: predicated region fallthrough
CT: control target
= control target key end

     0   :  { %10 = vsyncpa [#allocation3], 0  ;;  %s1187_s0 = inlined_call_operand.vmem [shape: f32[2,32,256], index: 0, kind: input, shape index: {}]   ;;  %s1188_s1 = inlined_call_operand.vmem [shape: bf16[96,32], index: 1, kind: input, shape index: {}]   ;;  %s1189_s2 = inlined_call_operand.vmem [shape: f32[96,1], index: 2, kind: input, shape index: {}]   ;;  %s1190_s3 = inlined_call_operand.hbm [shape: bf16[2,32,256], index: 3, kind: output, shape index: {0}]   ;;  %s1191_s4 = inlined_call_operand.hbm [shape: f32[2,64,256], index: 4, kind: output, shape index: {1}]  }
   0x1   :  { %12 = vsyncpa [#allocation3 + $0x1], 0 }
   0x2   :  { %13 = vsyncpa [#allocation5], 0 }
   0x3   :  { %15 = vsyncpa [#allocation5 + $0x1], 0  ;;  %s938_s15 = smov 0   ;;  %s940_s16 = smov 0  }
   0x4   :  { %s942_s17 = smov 0   ;;  %s944_s18 = smov 0  }
   0x5   :  { %s946_s19 = smov 0   ;;  %s948_s20 = smov 0  }
   0x6 LB: > { %s677_s21 = sadd.s32 4294967295, %s904_s20   ;;  %s678_s22 = sadd.s32 4294967294, %s904_s20   ;;  %s904_s20 = sphi %s948_s20, %s21_s20   ;;  %s900_s19 = sphi %s946_s19, %s1198_s19   ;;  %s896_s18 = sphi %s944_s18, %s1197_s18   ;;  %s892_s17 = sphi %s942_s17, %s1196_s17   ;;  %s888_s16 = sphi %s940_s16, %s1195_s16   ;;  %s884_s15 = sphi %s938_s15, %s1194_s15  }
   0x7   : > { %s33_s23 = sadd.s32 1, %s900_s19  ;;  %s112_s24 = sadd.s32 1, %s892_s17 }
   0x8   : > { %p35_p0 = scmp.ge.s32.totalorder %s33_s23, 2  ;;  %p122_p1 = scmp.ne.s32.totalorder %s892_s17, %s888_s16 }
   0x9   : > { %p123_p2 = scmp.eq.s32.totalorder %s677_s21, 1  ;;  %p128_p3 = scmp.ne.s32.totalorder %s888_s16, %s884_s15 }
   0xa   : > { %s1200_s23 = smov (%p35_p0, %s33_s23), 0  ;;  %p129_p5 = scmp.eq.s32.totalorder %s678_s22, 1 }
   0xb   : > { %p978_p4 = por %p123_p2, %p122_p1  ;;  %s107_s26 = ssub.s32 %s900_s19, %s1200_s23 }
   0xc   : > { %p681_p6 = scmp.ge.s32.totalorder %s904_s20, 1  ;;  %p110_p7 = scmp.eq.s32.totalorder %s107_s26, 0 }
   0xd   : > { %p985_p8 = por %p129_p5, %p128_p3  ;;  %p194_p9 = scmp.lt.s32.totalorder %s904_s20, 3 }
   0xe   : > { %s991_s28 = scalar_select %p110_p7, %s892_s17, %s112_s24  }
   0xf   : > { %p195_p10 = pnand %p681_p6, %p194_p9 }
  0x10   : > { %p230_p11 = scmp.lt.s32.totalorder (!%p195_p10), %s896_s18, 1  ;;  %v906_v0 = vmov (!%p195_p10), 0   ;;  %v268_v12 = vld [vmem:[%s1189_s2 + $0x10] sm:$0xff] (!%p195_p10)  ;;  %v266_v13 = vld [vmem:[%s1189_s2] sm:$0xff] (!%p195_p10)  ;;  %v789_v16 = vld [vmem:[%s1188_s1 + $0x18] sm:$0xff] (!%p195_p10)   ;;  %vm368_vm0 = vcmask (!%p195_p10), 261120  }
  0x11   : > { %198 = sbr.rel (%p195_p10) target bundleno = 306 (0x132), region = 32  ;;  %419 = vmatprep.mubr.bf16.mxu0 (!%p195_p10), %v906_v0  ;;  %449 = vmatprep.mubr.bf16.mxu1 (!%p195_p10), %v906_v0  ;;  %v788_v15 = vld [vmem:[%s1188_s1] sm:$0xff] (!%p195_p10)   ;;  %v269_v17 = vld [vmem:[%s1189_s2 + $0x18] sm:$0xff] (!%p195_p10)  ;;  %v267_v18 = vld [vmem:[%s1189_s2 + $0x8] sm:$0xff] (!%p195_p10)  ;;  %s1063_s12 = sand.u32 (!%p195_p10), 1, %s888_s16  }
  0x12   : > { %787 = vset.pattern.permute.xlu1 (!%p195_p10), %v906_v0  ;;  %786 = vset.pattern.permute.xlu0 (!%p195_p10), %v906_v0  ;;  %v271_v19 = vld [vmem:[%s1189_s2 + $0x28] sm:$0xff] (!%p195_p10)  ;;  %v270_v20 = vld [vmem:[%s1189_s2 + $0x20] sm:$0xff] (!%p195_p10)  ;;  %v273_v23 = vld [vmem:[%s1189_s2 + $0x38] sm:$0xff] (!%p195_p10)  ;;  %s683_s13 = sshll.u32 (!%p195_p10), %s1063_s12, 7  ;;  %s682_s14 = sshll.u32 (!%p195_p10), %s1063_s12, 5 }
  0x13   : > { %290 = vperm.xlu1 (!%p195_p10), %787, %v268_v12   ;;  %280 = vperm.xlu0 (!%p195_p10), %786, %v266_v13   ;;  %v790_v21 = vld [vmem:[%s1188_s1 + $0x8] sm:$0xff] (!%p195_p10)   ;;  %v791_v22 = vld [vmem:[%s1188_s1 + $0x20] sm:$0xff] (!%p195_p10)   ;;  %v272_v24 = vld [vmem:[%s1189_s2 + $0x30] sm:$0xff] (!%p195_p10)  ;;  %s1067_s21 = scalar_lea.vmem (!%p195_p10), [#allocation4], %s683_s13  ;;  %s1072_s22 = scalar_lea.vmem (!%p195_p10), [#allocation2], %s682_s14 }
  0x14   : > { %v275_v25 = vld [vmem:[%s1189_s2 + $0x48] sm:$0xff] (!%p195_p10)  ;;  %v274_v26 = vld [vmem:[%s1189_s2 + $0x40] sm:$0xff] (!%p195_p10)  ;;  %v792_v27 = vld [vmem:[%s1188_s1 + $0x10] sm:$0xff] (!%p195_p10)   ;;  %s545_s24 = sshll.u32 (!%p195_p10), %s1072_s22, 4  ;;  %s715_s26 = sshll.u32 (!%p195_p10), %s896_s18, 9  ;;  %s1080_s24 = int_to_ptr.vmem [resolvable:$true] %s545_s24 }
  0x15   : > { %v793_v28 = vld [vmem:[%s1188_s1 + $0x28] sm:$0xff] (!%p195_p10)   ;;  %v277_v29 = vld [vmem:[%s1189_s2 + $0x58] sm:$0xff] (!%p195_p10)  ;;  %v276_v30 = vld [vmem:[%s1189_s2 + $0x50] sm:$0xff] (!%p195_p10)  ;;  %s1087_s5 = scalar_lea.hbm (!%p195_p10), %s1190_s3, %s715_s26  ;;  %s716_s6 = sshll.u32 (!%p195_p10), %s896_s18, 11 }
  0x16   : > { %s525_s8 = scalar_lea.sflag (!%p195_p10), [#allocation3], %s1063_s12  ;;  %s794_s9 = scalar_lea.vmem (!%p195_p10), %s1080_s24, 512 }
  0x17   : > { %295 = vperm.xlu1 (!%p195_p10), %787, %v269_v17   ;;  %285 = vperm.xlu0 (!%p195_p10), %786, %v267_v18   ;;  %p795_p12 = scmp.ne.s32.totalorder (!%p195_p10), %s1080_s24, %s794_s9  ;;  %s907_s10 = smov (!%p195_p10), [#allocation2]  }
  0x18   : > { %s231_s29 = scalar_select %p230_p11, %s896_s18, 1 }
  0x19   : > { %p796_p13 = pnand %p795_p12, %p978_p4  ;;  %s798_s11 = sshll.u32 %s907_s10, 4  ;;  %s799_s11 = int_to_ptr.vmem [resolvable:$false] %s798_s11 }
  0x1a   : > { %s710_s30 = sshll.u32 %s231_s29, 6  ;;  %s800_s13 = scalar_lea.vmem %s799_s11, 1024 }
  0x1b   : > { %s237_s7 = scalar_lea.vmem %s1187_s0, %s710_s30  ;;  %305 = vperm.xlu1 %787, %v271_v19   ;;  %300 = vperm.xlu0 %786, %v270_v20   ;;  %p797_p0 = pneg %p796_p13 }
  0x1c   : > { %v243_v1 = vld [vmem:[%s237_s7 + $0x8] sm:$0xff]  ;;  %v245_v2 = vld [vmem:[%s237_s7 + $0x18] sm:$0xff]  ;;  %v242_v3 = vld [vmem:[%s237_s7] sm:$0xff]  ;;  %p801_p1 = scmp.lt.s32.totalorder %s1080_s24, %s799_s11  ;;  %p802_p2 = scmp.lt.s32.totalorder %s800_s13, %s794_s9 }
  0x1d   : > { %v251_v4 = vpack.c.bf16 %v245_v2, %v243_v1  ;;  %v244_v5 = vld [vmem:[%s237_s7 + $0x10] sm:$0xff]  ;;  %v247_v6 = vld [vmem:[%s237_s7 + $0x28] sm:$0xff]  ;;  %v249_v7 = vld [vmem:[%s237_s7 + $0x38] sm:$0xff] }
  0x1e   : > { %v250_v8 = vpack.c.bf16 %v244_v5, %v242_v3  ;;  %v253_v9 = vpack.c.bf16 %v249_v7, %v247_v6  ;;  %v246_v10 = vld [vmem:[%s237_s7 + $0x20] sm:$0xff]  ;;  %v248_v11 = vld [vmem:[%s237_s7 + $0x30] sm:$0xff]  ;;  %s563_s7 = sshll.u32 %s1067_s21, 4  ;;  %p803_p3 = por %p802_p2, %p801_p1  ;;  %s1132_s7 = int_to_ptr.vmem [resolvable:$true] %s563_s7 }
  0x1f   : > { %387 = vmatprep.subr.bf16.mxu0 %v251_v4  ;;  %717 = vmatprep.subr.bf16.mxu1 %v251_v4  ;;  %v252_v14 = vpack.c.bf16 %v248_v11, %v246_v10 }
  0x20   : > { %388 = vmatpush1.bf16.msra.mxu0 %v250_v8  ;;  %719 = vmatpush1.bf16.msra.mxu1 %v250_v8  ;;  %p804_p5 = pnand %p803_p3, %p797_p0 }
  0x21   : > { %389 = vmatprep.subr.bf16.mxu0 %v253_v9  ;;  %718 = vmatprep.subr.bf16.mxu1 %v253_v9 }
  0x22   : > { %315 = vperm.xlu1 %787, %v273_v23   ;;  %310 = vperm.xlu0 %786, %v272_v24  }
  0x24   : > { %390 = vmatpush1.bf16.msra.mxu0 %v252_v14  ;;  %720 = vmatpush1.bf16.msra.mxu1 %v252_v14 }
  0x26   : > { %325 = vperm.xlu1 %787, %v275_v25   ;;  %320 = vperm.xlu0 %786, %v274_v26  }
  0x27   : > { %692 = vmatmul.mubr.msk.bf16.vlgmr.msra.gmra.mrb[0].mxu0 %vm368_vm0, %v788_v15  ;;  %695 = vmatmul.mubr.msk.bf16.vlgmr.msra.gmra.mrb[0].mxu1 %vm368_vm0, %v789_v16 }
  0x28   : > { %429 = vmatprep.mubr.bf16.mxu0 %v906_v0  ;;  %459 = vmatprep.mubr.bf16.mxu1 %v906_v0 }
  0x2a   : > { %335 = vperm.xlu1 %787, %v277_v29   ;;  %330 = vperm.xlu0 %786, %v276_v30  }
  0x2f   : > { %693 = vmatmul.mubr.msk.bf16.gmra.mrb[4].mxu0 %vm368_vm0, %v790_v21  ;;  %696 = vmatmul.mubr.msk.bf16.gmra.mrb[4].mxu1 %vm368_vm0, %v791_v22 }
  0x30   : > { %439 = vmatprep.mubr.bf16.mxu0 %v906_v0  ;;  %469 = vmatprep.mubr.bf16.mxu1 %v906_v0 }
  0x37   : > { %694 = vmatmul.mubr.msk.bf16.gmra.mrb[8].mxu0 %vm368_vm0, %v792_v27  ;;  %697 = vmatmul.mubr.msk.bf16.gmra.mrb[8].mxu1 %vm368_vm0, %v793_v28 }
  0x92   : > { %v291_v31 = vpop.permute.xlu1 %290  ;;  %v281_v32 = vpop.permute.xlu0 %280 }
  0x96   : > { %v296_v33 = vpop.permute.xlu1 %295  ;;  %v286_v34 = vpop.permute.xlu0 %285 }
  0x9a   : > { %v1058_v35 = vpop.permute.xlu1 %305  ;;  %v1060_v36 = vpop.permute.xlu0 %300 }
  0xa1   : > { %v316_v37 = vpop.permute.xlu1 %315  ;;  %v311_v38 = vpop.permute.xlu0 %310 }
  0xa5   : > { %v326_v57 = vpop.permute.xlu1 %325  ;;  %v321_v58 = vpop.permute.xlu0 %320 }
  0xa9   : > { %v336_v13 = vpop.permute.xlu1 %335  ;;  %v331_v14 = vpop.permute.xlu0 %330 }
  0xfa   : > { %v421_v39 = vpop.f32.mrb[0].mxu0  ;;  %v451_v40 = vpop.f32.mrb[0].mxu1 }
  0xfb   : > { %v422_v41 = vadd.f32 %v421_v39, %v281_v32  ;;  %v452_v42 = vadd.f32 %v451_v40, %v311_v38  ;;  %v423_v43 = vpop.f32.mrb[1].mxu0  ;;  %v453_v44 = vpop.f32.mrb[1].mxu1 }
  0xfc   : > { %v424_v45 = vadd.f32 %v423_v43, %v281_v32  ;;  %v454_v46 = vadd.f32 %v453_v44, %v311_v38  ;;  %v425_v47 = vpop.f32.mrb[2].mxu0  ;;  %v455_v48 = vpop.f32.mrb[2].mxu1 }
  0xfd   : > { %512 = vst [vmem:[%s1067_s21 + $0x20] sm:$0xff] %v452_v42  ;;  %v426_v49 = vadd.f32 %v425_v47, %v286_v34  ;;  %v456_v50 = vadd.f32 %v455_v48, %v316_v37  ;;  %v427_v51 = vpop.f32.mrb[3].mxu0  ;;  %v457_v52 = vpop.f32.mrb[3].mxu1 }
  0xfe   : > { %v711_v53 = vpack.c.bf16 %v424_v45, %v422_v41  ;;  %513 = vst [vmem:[%s1067_s21 + $0x28] sm:$0xff] %v454_v46  ;;  %v428_v54 = vadd.f32 %v427_v51, %v286_v34  ;;  %v458_v55 = vadd.f32 %v457_v52, %v316_v37 }
  0xff   : > { %514 = vst [vmem:[%s1067_s21 + $0x30] sm:$0xff] %v456_v50 }
 0x100   : > { %504 = vst [vmem:[%s1072_s22] sm:$0xff] %v711_v53  ;;  %v712_v56 = vpack.c.bf16 %v428_v54, %v426_v49  ;;  %515 = vst [vmem:[%s1067_s21 + $0x38] sm:$0xff] %v458_v55 }
 0x102   : > { %505 = vst [vmem:[%s1072_s22 + $0x8] sm:$0xff] %v712_v56  ;;  %v431_v59 = vpop.f32.mrb[4].mxu0  ;;  %v461_v60 = vpop.f32.mrb[4].mxu1 }
 0x103   : > { %v432_v61 = vadd.f32 %v431_v59, %v291_v31  ;;  %v462_v62 = vadd.f32 %v461_v60, %v321_v58  ;;  %v433_v63 = vpop.f32.mrb[5].mxu0  ;;  %v463_v0 = vpop.f32.mrb[5].mxu1 }
 0x104   : > { %v434_v1 = vadd.f32 %v433_v63, %v291_v31  ;;  %v464_v2 = vadd.f32 %v463_v0, %v321_v58  ;;  %v435_v3 = vpop.f32.mrb[6].mxu0  ;;  %v465_v4 = vpop.f32.mrb[6].mxu1 }
 0x105   : > { %516 = vst [vmem:[%s1067_s21 + $0x40] sm:$0xff] %v462_v62  ;;  %v436_v5 = vadd.f32 %v435_v3, %v296_v33  ;;  %v466_v6 = vadd.f32 %v465_v4, %v326_v57  ;;  %v437_v7 = vpop.f32.mrb[7].mxu0  ;;  %v467_v8 = vpop.f32.mrb[7].mxu1 }
 0x106   : > { %v713_v9 = vpack.c.bf16 %v434_v1, %v432_v61  ;;  %517 = vst [vmem:[%s1067_s21 + $0x48] sm:$0xff] %v464_v2  ;;  %v438_v10 = vadd.f32 %v437_v7, %v296_v33  ;;  %v468_v11 = vadd.f32 %v467_v8, %v326_v57 }
 0x107   : > { %518 = vst [vmem:[%s1067_s21 + $0x50] sm:$0xff] %v466_v6 }
 0x108   : > { %506 = vst [vmem:[%s1072_s22 + $0x10] sm:$0xff] %v713_v9  ;;  %v714_v12 = vpack.c.bf16 %v438_v10, %v436_v5  ;;  %519 = vst [vmem:[%s1067_s21 + $0x58] sm:$0xff] %v468_v11 }
 0x10a   : > { %507 = vst [vmem:[%s1072_s22 + $0x18] sm:$0xff] %v714_v12  ;;  %v441_v15 = vpop.f32.mrb[8].mxu0  ;;  %v471_v16 = vpop.f32.mrb[8].mxu1 }
 0x10b   : > { %v442_v17 = vadd.f32 %v441_v15, %v1060_v36  ;;  %v472_v18 = vadd.f32 %v471_v16, %v331_v14  ;;  %v443_v19 = vpop.f32.mrb[9].mxu0  ;;  %v473_v20 = vpop.f32.mrb[9].mxu1 }
 0x10c   : > { %807 = shalt.err (!%p804_p5)
}
 0x10d   : > { %s808_s14 = scalar_lea.hbm %s1087_s5, 512  ;;  %s812_s29 = scalar_lea.hbm %s1190_s3, 1024 }
 0x10e   : > { %p809_p6 = scmp.ne.s32.totalorder %s1087_s5, %s808_s14  ;;  %p813_p10 = scmp.lt.u32.totalorder %s1087_s5, %s1190_s3 }
 0x10f   : > { %p814_p11 = scmp.lt.u32.totalorder %s812_s29, %s808_s14  ;;  %p816_p13 = scmp.lt.u32.totalorder %s808_s14, %s1087_s5 }
 0x110   : > { %p810_p7 = pnand %p809_p6, %p978_p4 }
 0x111   : > { %p815_p12 = por %p814_p11, %p813_p10 }
 0x112   : > { %p811_p9 = pneg %p810_p7 }
 0x113   : > { %p817_p0 = por %p816_p13, %p815_p12 }
 0x115   : > { %p818_p1 = pnand %p817_p0, %p811_p9 }
 0x117   : > { %821 = shalt.err (!%p818_p1)
}
 0x118   : > { %s908_s9 = smov 128   ;;  %s909_s11 = smov 8   ;;  %v444_v21 = vadd.f32 %v443_v19, %v1060_v36  ;;  %v474_v22 = vadd.f32 %v473_v20, %v331_v14  ;;  %v445_v23 = vpop.f32.mrb[10].mxu0  ;;  %v475_v24 = vpop.f32.mrb[10].mxu1  ;;  %508 = vst [vmem:[%s1067_s21] sm:$0xff] %v442_v17  ;;  %520 = vst [vmem:[%s1067_s21 + $0x60] sm:$0xff] %v472_v18 }
 0x119   : > { %721 = dma.vmem_to_hbm [thread:$0]  (%p978_p4), %s1080_s24, 512, %s1087_s5, %s525_s8, %s908_s9, %s908_s9, %s909_s11   ;;  %v446_v25 = vadd.f32 %v445_v23, %v1058_v35  ;;  %v476_v26 = vadd.f32 %v475_v24, %v336_v13  ;;  %v447_v27 = vpop.f32.mrb[11].mxu0  ;;  %v477_v28 = vpop.f32.mrb[11].mxu1 }
 0x11a   : > { %s1128_s8 = scalar_lea.hbm %s1191_s4, %s716_s6  ;;  %509 = vst [vmem:[%s1067_s21 + $0x8] sm:$0xff] %v444_v21  ;;  %521 = vst [vmem:[%s1067_s21 + $0x68] sm:$0xff] %v474_v22  ;;  %v448_v29 = vadd.f32 %v447_v27, %v1058_v35  ;;  %v478_v30 = vadd.f32 %v477_v28, %v336_v13  ;;  %s530_s18 = scalar_lea.sflag [#allocation5], %s1063_s12 }
 0x11b   : > { %510 = vst [vmem:[%s1067_s21 + $0x10] sm:$0xff] %v446_v25  ;;  %522 = vst [vmem:[%s1067_s21 + $0x70] sm:$0xff] %v476_v26  ;;  %s822_s13 = scalar_lea.vmem %s1132_s7, 2048  ;;  %s910_s6 = smov [#allocation4]  }
 0x11c   : > { %511 = vst [vmem:[%s1067_s21 + $0x18] sm:$0xff] %v448_v29  ;;  %523 = vst [vmem:[%s1067_s21 + $0x78] sm:$0xff] %v478_v30  ;;  %p823_p2 = scmp.ne.s32.totalorder %s1132_s7, %s822_s13  ;;  %s826_s14 = sshll.u32 %s910_s6, 4  ;;  %s827_s14 = int_to_ptr.vmem [resolvable:$false] %s826_s14 }
 0x11d   : > { %s828_s22 = scalar_lea.vmem %s827_s14, 4096  ;;  %p829_p6 = scmp.lt.s32.totalorder %s1132_s7, %s827_s14 }
 0x11e   : > { %p824_p3 = pnand %p823_p2, %p978_p4  ;;  %p830_p7 = scmp.lt.s32.totalorder %s828_s22, %s822_s13 }
 0x120   : > { %p825_p5 = pneg %p824_p3  ;;  %p831_p9 = por %p830_p7, %p829_p6 }
 0x122   : > { %p832_p10 = pnand %p831_p9, %p825_p5 }
 0x124   : > { %835 = shalt.err (!%p832_p10)
}
 0x125   : > { %s836_s21 = scalar_lea.hbm %s1128_s8, 2048  ;;  %s840_s30 = scalar_lea.hbm %s1191_s4, 4096 }
 0x126   : > { %p837_p11 = scmp.ne.s32.totalorder %s1128_s8, %s836_s21  ;;  %p841_p0 = scmp.lt.u32.totalorder %s1128_s8, %s1191_s4 }
 0x127   : > { %p842_p1 = scmp.lt.u32.totalorder %s840_s30, %s836_s21  ;;  %p844_p3 = scmp.lt.u32.totalorder %s836_s21, %s1128_s8 }
 0x128   : > { %p838_p12 = pnand %p837_p11, %p978_p4 }
 0x129   : > { %p843_p2 = por %p842_p1, %p841_p0 }
 0x12a   : > { %p839_p13 = pneg %p838_p12 }
 0x12b   : > { %p845_p5 = por %p844_p3, %p843_p2 }
 0x12d   : > { %p846_p6 = pnand %p845_p5, %p839_p13 }
 0x12f   : > { %849 = shalt.err (!%p846_p6)
}
 0x130   : > { %s911_s11 = smov 256   ;;  %s912_s24 = smov 16  }
 0x131   : > { %722 = dma.vmem_to_hbm [thread:$0]  (%p978_p4), %s1132_s7, 2048, %s1128_s8, %s530_s18, %s911_s11, %s911_s11, %s912_s24  }
 0x132 PF: > { %p732_p7 = scmp.ge.s32.totalorder %s904_s20, 2  ;;  %s578_s5 = sand.u32 1, %s884_s15  }
 0x133   : > { %s579_s13 = scalar_lea.sflag [#allocation3], %s578_s5 }
 0x134   : > { %p726_p9 = pnand %p732_p7, %p985_p8 }
 0x136   : > { %875 = dma.done.wait (!%p726_p9), %s579_s13, 512  }
 0x137   : > { %877 = vsyncadd (!%p726_p9), %s579_s13, 4294966784  ;;  %s588_s6 = scalar_lea.sflag [#allocation5], %s578_s5 }
 0x138   : > { %879 = dma.done.wait (!%p726_p9), %s588_s6, 2048  }
 0x139   : > { %881 = vsyncadd (!%p726_p9), %s588_s6, 4294965248  ;;  %s21_s20 = sadd.s32 1, %s904_s20   ;;  %s1194_s15 = smov %s888_s16 }
 0x13a   : > { %p18_p10 = scmp.ge.s32.totalorder %s21_s20, 4   ;;  %s1195_s16 = smov %s892_s17 }
 0x13b   : > { %s1196_s17 = smov %s991_s28  ;;  %s1197_s18 = smov %s900_s19 }
 0x13c   : > { %s1198_s19 = smov %s1200_s23  ;;  %20 = sbr.rel (!%p18_p10) target bundleno = 6 (0x6), region = 84 }
 0x143   :  { %593 = vsyncpa [#allocation3], 1 }
 0x144   :  { %595 = vsyncpa [#allocation3 + $0x1], 1 }
 0x145   :  { %596 = vsyncpa [#allocation5], 1 }
 0x146   :  { %598 = vsyncpa [#allocation5 + $0x1], 1 }

</bundles_post_ra>
